<compile_context>
chip_gen: v5e
topology: v5e:2x2
jax: 0.10.0
libtpu: 0.0.40
codegen_flags: <defaults>
</compile_context>

<pallas_src>
import jax
import jax.numpy as jnp
from jax.experimental import pallas as pl
from jax.experimental.pallas import tpu as pltpu


def lstm_tagger_kernel(ids_ref, emb_ref, wih_ref, whh_ref, bg_ref, wtag_ref, btag_ref,
                       out_ref, gx_ref, hs_ref):
    seq_len = gx_ref.shape[0]
    vocab = emb_ref.shape[0]
    H = whh_ref.shape[0]

    # --- Fused embedding lookup (one-hot MXU matmul == exact row gather) + hoisted
    #     input projection.  No serial dependence, done once before the recurrence. ---
    ids = ids_ref[...]                                                    # (S, 1) int32
    onehot = (jax.lax.broadcasted_iota(jnp.int32, (seq_len, vocab), 1) == ids
              ).astype(jnp.float32)                                       # (S, V)
    embeds = jnp.dot(onehot, emb_ref[...],
                     preferred_element_type=jnp.float32)                  # (S, E)
    gx_ref[...] = (
        jnp.dot(embeds, wih_ref[...], preferred_element_type=jnp.float32)
        + bg_ref[...]
    )                                                                     # (S, 4H) i,f,g,o

    # --- Serial recurrence: per step only h @ W_hh^T, full-vreg nonlinearities ---
    def step(t, carry):
        h, c = carry                                                      # (1, H) each
        gates = (
            jnp.dot(h, whh_ref[...], preferred_element_type=jnp.float32)
            + gx_ref[pl.ds(t, 1), :]
        )                                                                 # (1, 4H)
        sig_all = jax.nn.sigmoid(gates)                                   # one EUP op
        tanh_all = jnp.tanh(gates)                                        # one EUP op
        i_g = sig_all[:, 0:H]
        f_g = sig_all[:, H:2 * H]
        g_g = tanh_all[:, 2 * H:3 * H]
        o_g = sig_all[:, 3 * H:4 * H]
        c_new = f_g * c + i_g * g_g
        h_new = o_g * jnp.tanh(c_new)
        hs_ref[pl.ds(t, 1), :] = h_new                                    # stash h_t
        return h_new, c_new

    h0 = jnp.zeros((1, H), jnp.float32)
    c0 = jnp.zeros((1, H), jnp.float32)
    jax.lax.fori_loop(0, seq_len, step, (h0, c0), unroll=True)

    # --- Post-loop: hidden2tag + log_softmax, batched over all S rows, one store ---
    tag = (
        jnp.dot(hs_ref[...], wtag_ref[...], preferred_element_type=jnp.float32)
        + btag_ref[...]
    )                                                                     # (S, T)
    m = jnp.max(tag, axis=1, keepdims=True)
    z = tag - m
    lse = jnp.log(jnp.sum(jnp.exp(z), axis=1, keepdims=True))
    out_ref[...] = z - lse                                                # log_softmax rows


def lstm_tagger_forward(sentence, params):
    emb_table, w_ih, w_hh, b_ih, b_hh, w_tag, b_tag = params
    seq_len = sentence.shape[0]
    hidden_dim = w_hh.shape[1]
    tagset_size = w_tag.shape[0]

    # Glue is now only dtype casts / re-layout (weights pre-transposed); the embedding
    # gather itself happens inside the kernel.
    ids2d = sentence.astype(jnp.int32).reshape(seq_len, 1)               # (S, 1)
    emb = emb_table.astype(jnp.float32)                                  # (V, E)
    wih_t = w_ih.T.astype(jnp.float32)                                   # (E, 4H)
    whh_t = w_hh.T.astype(jnp.float32)                                   # (H, 4H)
    b_gates = (b_ih + b_hh).reshape(1, -1).astype(jnp.float32)           # (1, 4H)
    wtag_t = w_tag.T.astype(jnp.float32)                                 # (H, T)
    btag = b_tag.reshape(1, -1).astype(jnp.float32)                      # (1, T)

    vmem = pl.BlockSpec(memory_space=pltpu.MemorySpace.VMEM)
    out = pl.pallas_call(
        lstm_tagger_kernel,
        out_shape=jax.ShapeDtypeStruct((seq_len, tagset_size), jnp.float32),
        in_specs=[vmem] * 7,
        out_specs=vmem,
        scratch_shapes=[
            pltpu.VMEM((seq_len, 4 * hidden_dim), jnp.float32),  # precomputed x-gates
            pltpu.VMEM((seq_len, hidden_dim), jnp.float32),      # hidden states
        ],
    )(ids2d, emb, wih_t, whh_t, b_gates, wtag_t, btag)
    return out
    # TODO(synk): for batched inference on v7x, add a leading batch grid axis marked
    # "parallel" so the second TensorCore processes a different sentence.


def reference_forward(sentence, params):
    """Pure-JAX reference matching torch.nn.LSTM / Linear / log_softmax semantics."""
    emb_table, w_ih, w_hh, b_ih, b_hh, w_tag, b_tag = params
    H = w_hh.shape[1]
    embeds = jnp.take(emb_table, sentence, axis=0)

    def step(carry, x):
        h, c = carry
        gates = x @ w_ih.T + b_ih + h @ w_hh.T + b_hh
        i = jax.nn.sigmoid(gates[0:H])
        f = jax.nn.sigmoid(gates[H:2 * H])
        g = jnp.tanh(gates[2 * H:3 * H])
        o = jax.nn.sigmoid(gates[3 * H:4 * H])
        c_new = f * c + i * g
        h_new = o * jnp.tanh(c_new)
        return (h_new, c_new), h_new

    (_, _), hs = jax.lax.scan(step, (jnp.zeros(H), jnp.zeros(H)), embeds)
    tag_space = hs @ w_tag.T + b_tag
    return jax.nn.log_softmax(tag_space, axis=1)


if __name__ == "__main__":
    # Small shapes consistent with the module.
    embedding_dim = 16
    hidden_dim = 32
    vocab_size = 20
    tagset_size = 8
    seq_len = 8

    key = jax.random.PRNGKey(0)
    ks = jax.random.split(key, 8)
    bound = 1.0 / jnp.sqrt(hidden_dim)

    emb_table = jax.random.normal(ks[0], (vocab_size, embedding_dim), jnp.float32)
    w_ih = jax.random.uniform(ks[1], (4 * hidden_dim, embedding_dim), jnp.float32, -bound, bound)
    w_hh = jax.random.uniform(ks[2], (4 * hidden_dim, hidden_dim), jnp.float32, -bound, bound)
    b_ih = jax.random.uniform(ks[3], (4 * hidden_dim,), jnp.float32, -bound, bound)
    b_hh = jax.random.uniform(ks[4], (4 * hidden_dim,), jnp.float32, -bound, bound)
    w_tag = jax.random.uniform(ks[5], (tagset_size, hidden_dim), jnp.float32, -bound, bound)
    b_tag = jax.random.uniform(ks[6], (tagset_size,), jnp.float32, -bound, bound)
    params = (emb_table, w_ih, w_hh, b_ih, b_hh, w_tag, b_tag)

    sentence = jax.random.randint(ks[7], (seq_len,), 0, vocab_size, jnp.int32)

    tag_scores = jax.block_until_ready(lstm_tagger_forward(sentence, params))
    ref = jax.block_until_ready(reference_forward(sentence, params))

    assert tag_scores.shape == (seq_len, tagset_size)
    assert jnp.allclose(tag_scores, ref, atol=1e-5, rtol=1e-5)
    print("KERNEL_OK")
</pallas_src>

<mosaic_0001>
module attributes {stable_mosaic.version = 11 : i64} {
  func.func @lstm_tagger_kernel(%arg0: memref<8x1xi32, #tpu.memory_space<vmem>>, %arg1: memref<20x16xf32, #tpu.memory_space<vmem>>, %arg2: memref<16x128xf32, #tpu.memory_space<vmem>>, %arg3: memref<32x128xf32, #tpu.memory_space<vmem>>, %arg4: memref<1x128xf32, #tpu.memory_space<vmem>>, %arg5: memref<32x8xf32, #tpu.memory_space<vmem>>, %arg6: memref<1x8xf32, #tpu.memory_space<vmem>>, %arg7: memref<8x8xf32, #tpu.memory_space<vmem>>, %arg8: memref<8x128xf32, #tpu.memory_space<vmem>>, %arg9: memref<8x32xf32, #tpu.memory_space<vmem>>) attributes {dimension_semantics = [], scalar_prefetch = 0 : i64, scratch_operands = 2 : i64, tpu.core_type = #tpu.core_type<tc>} {
    %c0 = arith.constant 0 : index
    %c0_0 = arith.constant 0 : index
    %0 = vector.load %arg0[%c0, %c0_0] : memref<8x1xi32, #tpu.memory_space<vmem>>, vector<8x1xi32>
    %1 = tpu.iota {dimensions = array<i32: 1>} : vector<8x20xi32>
    %2 = vector.broadcast %0 : vector<8x1xi32> to vector<8x20xi32>
    %3 = arith.cmpi eq, %1, %2 : vector<8x20xi32>
    %4 = arith.extui %3 : vector<8x20xi1> to vector<8x20xi32>
    %5 = arith.sitofp %4 : vector<8x20xi32> to vector<8x20xf32>
    %c0_1 = arith.constant 0 : index
    %c0_2 = arith.constant 0 : index
    %6 = vector.load %arg1[%c0_1, %c0_2] : memref<20x16xf32, #tpu.memory_space<vmem>>, vector<20x16xf32>
    %cst = arith.constant dense<0.000000e+00> : vector<8x16xf32>
    %7 = tpu.matmul %5, %6, %cst {dimension_numbers = #tpu.dot_dimension_numbers<[1], [0], [0], [1], [0, 0, 1, 1], [], []>} : vector<8x20xf32>, vector<20x16xf32>, vector<8x16xf32> -> vector<8x16xf32>
    %c0_3 = arith.constant 0 : index
    %c0_4 = arith.constant 0 : index
    %8 = vector.load %arg2[%c0_3, %c0_4] : memref<16x128xf32, #tpu.memory_space<vmem>>, vector<16x128xf32>
    %cst_5 = arith.constant dense<0.000000e+00> : vector<8x128xf32>
    %9 = tpu.matmul %7, %8, %cst_5 {dimension_numbers = #tpu.dot_dimension_numbers<[1], [0], [0], [1], [0, 0, 1, 1], [], []>} : vector<8x16xf32>, vector<16x128xf32>, vector<8x128xf32> -> vector<8x128xf32>
    %c0_6 = arith.constant 0 : index
    %c0_7 = arith.constant 0 : index
    %10 = vector.load %arg4[%c0_6, %c0_7] : memref<1x128xf32, #tpu.memory_space<vmem>>, vector<1x128xf32>
    %11 = vector.broadcast %10 : vector<1x128xf32> to vector<8x128xf32>
    %12 = arith.addf %9, %11 : vector<8x128xf32>
    %c0_8 = arith.constant 0 : index
    %c0_9 = arith.constant 0 : index
    %13 = vector.load %arg8[%c0_8, %c0_9] : memref<8x128xf32, #tpu.memory_space<vmem>>, vector<8x128xf32>
    tpu.vector_store %arg8[%c0_8, %c0_9], %12 {strides = array<i32>} : memref<8x128xf32, #tpu.memory_space<vmem>>, vector<8x128xf32>,
    %cst_10 = arith.constant 0.000000e+00 : f32
    %14 = vector.broadcast %cst_10 : f32 to vector<1x32xf32>
    %cst_11 = arith.constant 0.000000e+00 : f32
    %15 = vector.broadcast %cst_11 : f32 to vector<1x32xf32>
    %c0_i32 = arith.constant 0 : i32
    %c0_12 = arith.constant 0 : index
    %c0_13 = arith.constant 0 : index
    %16 = vector.load %arg3[%c0_12, %c0_13] : memref<32x128xf32, #tpu.memory_space<vmem>>, vector<32x128xf32>
    %cst_14 = arith.constant dense<0.000000e+00> : vector<1x128xf32>
    %17 = tpu.matmul %14, %16, %cst_14 {dimension_numbers = #tpu.dot_dimension_numbers<[1], [0], [0], [1], [0, 0, 1, 1], [], []>} : vector<1x32xf32>, vector<32x128xf32>, vector<1x128xf32> -> vector<1x128xf32>
    %18 = arith.index_cast %c0_i32 : i32 to index
    %c0_15 = arith.constant 0 : index
    %19 = vector.load %arg8[%18, %c0_15] : memref<8x128xf32, #tpu.memory_space<vmem>>, vector<1x128xf32>
    %20 = arith.addf %17, %19 : vector<1x128xf32>
    %21 = arith.negf %20 : vector<1x128xf32>
    %22 = math.exp %21 : vector<1x128xf32>
    %cst_16 = arith.constant 1.000000e+00 : f32
    %23 = vector.broadcast %cst_16 : f32 to vector<1x128xf32>
    %24 = arith.addf %23, %22 : vector<1x128xf32>
    %25 = arith.divf %23, %24 : vector<1x128xf32>
    %26 = math.tanh %20 : vector<1x128xf32>
    %27 = vector.extract_strided_slice %25 {offsets = [0, 0], sizes = [1, 32], strides = [1, 1]} : vector<1x128xf32> to vector<1x32xf32>
    %28 = vector.extract_strided_slice %25 {offsets = [0, 32], sizes = [1, 32], strides = [1, 1]} : vector<1x128xf32> to vector<1x32xf32>
    %29 = vector.extract_strided_slice %26 {offsets = [0, 64], sizes = [1, 32], strides = [1, 1]} : vector<1x128xf32> to vector<1x32xf32>
    %30 = vector.extract_strided_slice %25 {offsets = [0, 96], sizes = [1, 32], strides = [1, 1]} : vector<1x128xf32> to vector<1x32xf32>
    %31 = arith.mulf %28, %15 : vector<1x32xf32>
    %32 = arith.mulf %27, %29 : vector<1x32xf32>
    %33 = arith.addf %31, %32 : vector<1x32xf32>
    %34 = math.tanh %33 : vector<1x32xf32>
    %35 = arith.mulf %30, %34 : vector<1x32xf32>
    %36 = arith.index_cast %c0_i32 : i32 to index
    %c0_17 = arith.constant 0 : index
    %37 = vector.load %arg9[%36, %c0_17] : memref<8x32xf32, #tpu.memory_space<vmem>>, vector<1x32xf32>
    tpu.vector_store %arg9[%36, %c0_17], %35 {strides = array<i32>} : memref<8x32xf32, #tpu.memory_space<vmem>>, vector<1x32xf32>,
    %c1_i32 = arith.constant 1 : i32
    %c0_18 = arith.constant 0 : index
    %c0_19 = arith.constant 0 : index
    %38 = vector.load %arg3[%c0_18, %c0_19] : memref<32x128xf32, #tpu.memory_space<vmem>>, vector<32x128xf32>
    %cst_20 = arith.constant dense<0.000000e+00> : vector<1x128xf32>
    %39 = tpu.matmul %35, %38, %cst_20 {dimension_numbers = #tpu.dot_dimension_numbers<[1], [0], [0], [1], [0, 0, 1, 1], [], []>} : vector<1x32xf32>, vector<32x128xf32>, vector<1x128xf32> -> vector<1x128xf32>
    %40 = arith.index_cast %c1_i32 : i32 to index
    %c0_21 = arith.constant 0 : index
    %41 = vector.load %arg8[%40, %c0_21] : memref<8x128xf32, #tpu.memory_space<vmem>>, vector<1x128xf32>
    %42 = arith.addf %39, %41 : vector<1x128xf32>
    %43 = arith.negf %42 : vector<1x128xf32>
    %44 = math.exp %43 : vector<1x128xf32>
    %cst_22 = arith.constant 1.000000e+00 : f32
    %45 = vector.broadcast %cst_22 : f32 to vector<1x128xf32>
    %46 = arith.addf %45, %44 : vector<1x128xf32>
    %47 = arith.divf %45, %46 : vector<1x128xf32>
    %48 = math.tanh %42 : vector<1x128xf32>
    %49 = vector.extract_strided_slice %47 {offsets = [0, 0], sizes = [1, 32], strides = [1, 1]} : vector<1x128xf32> to vector<1x32xf32>
    %50 = vector.extract_strided_slice %47 {offsets = [0, 32], sizes = [1, 32], strides = [1, 1]} : vector<1x128xf32> to vector<1x32xf32>
    %51 = vector.extract_strided_slice %48 {offsets = [0, 64], sizes = [1, 32], strides = [1, 1]} : vector<1x128xf32> to vector<1x32xf32>
    %52 = vector.extract_strided_slice %47 {offsets = [0, 96], sizes = [1, 32], strides = [1, 1]} : vector<1x128xf32> to vector<1x32xf32>
    %53 = arith.mulf %50, %33 : vector<1x32xf32>
    %54 = arith.mulf %49, %51 : vector<1x32xf32>
    %55 = arith.addf %53, %54 : vector<1x32xf32>
    %56 = math.tanh %55 : vector<1x32xf32>
    %57 = arith.mulf %52, %56 : vector<1x32xf32>
    %58 = arith.index_cast %c1_i32 : i32 to index
    %c0_23 = arith.constant 0 : index
    %59 = vector.load %arg9[%58, %c0_23] : memref<8x32xf32, #tpu.memory_space<vmem>>, vector<1x32xf32>
    tpu.vector_store %arg9[%58, %c0_23], %57 {strides = array<i32>} : memref<8x32xf32, #tpu.memory_space<vmem>>, vector<1x32xf32>,
    %c2_i32 = arith.constant 2 : i32
    %c0_24 = arith.constant 0 : index
    %c0_25 = arith.constant 0 : index
    %60 = vector.load %arg3[%c0_24, %c0_25] : memref<32x128xf32, #tpu.memory_space<vmem>>, vector<32x128xf32>
    %cst_26 = arith.constant dense<0.000000e+00> : vector<1x128xf32>
    %61 = tpu.matmul %57, %60, %cst_26 {dimension_numbers = #tpu.dot_dimension_numbers<[1], [0], [0], [1], [0, 0, 1, 1], [], []>} : vector<1x32xf32>, vector<32x128xf32>, vector<1x128xf32> -> vector<1x128xf32>
    %62 = arith.index_cast %c2_i32 : i32 to index
    %c0_27 = arith.constant 0 : index
    %63 = vector.load %arg8[%62, %c0_27] : memref<8x128xf32, #tpu.memory_space<vmem>>, vector<1x128xf32>
    %64 = arith.addf %61, %63 : vector<1x128xf32>
    %65 = arith.negf %64 : vector<1x128xf32>
    %66 = math.exp %65 : vector<1x128xf32>
    %cst_28 = arith.constant 1.000000e+00 : f32
    %67 = vector.broadcast %cst_28 : f32 to vector<1x128xf32>
    %68 = arith.addf %67, %66 : vector<1x128xf32>
    %69 = arith.divf %67, %68 : vector<1x128xf32>
    %70 = math.tanh %64 : vector<1x128xf32>
    %71 = vector.extract_strided_slice %69 {offsets = [0, 0], sizes = [1, 32], strides = [1, 1]} : vector<1x128xf32> to vector<1x32xf32>
    %72 = vector.extract_strided_slice %69 {offsets = [0, 32], sizes = [1, 32], strides = [1, 1]} : vector<1x128xf32> to vector<1x32xf32>
    %73 = vector.extract_strided_slice %70 {offsets = [0, 64], sizes = [1, 32], strides = [1, 1]} : vector<1x128xf32> to vector<1x32xf32>
    %74 = vector.extract_strided_slice %69 {offsets = [0, 96], sizes = [1, 32], strides = [1, 1]} : vector<1x128xf32> to vector<1x32xf32>
    %75 = arith.mulf %72, %55 : vector<1x32xf32>
    %76 = arith.mulf %71, %73 : vector<1x32xf32>
    %77 = arith.addf %75, %76 : vector<1x32xf32>
    %78 = math.tanh %77 : vector<1x32xf32>
    %79 = arith.mulf %74, %78 : vector<1x32xf32>
    %80 = arith.index_cast %c2_i32 : i32 to index
    %c0_29 = arith.constant 0 : index
    %81 = vector.load %arg9[%80, %c0_29] : memref<8x32xf32, #tpu.memory_space<vmem>>, vector<1x32xf32>
    tpu.vector_store %arg9[%80, %c0_29], %79 {strides = array<i32>} : memref<8x32xf32, #tpu.memory_space<vmem>>, vector<1x32xf32>,
    %c3_i32 = arith.constant 3 : i32
    %c0_30 = arith.constant 0 : index
    %c0_31 = arith.constant 0 : index
    %82 = vector.load %arg3[%c0_30, %c0_31] : memref<32x128xf32, #tpu.memory_space<vmem>>, vector<32x128xf32>
    %cst_32 = arith.constant dense<0.000000e+00> : vector<1x128xf32>
    %83 = tpu.matmul %79, %82, %cst_32 {dimension_numbers = #tpu.dot_dimension_numbers<[1], [0], [0], [1], [0, 0, 1, 1], [], []>} : vector<1x32xf32>, vector<32x128xf32>, vector<1x128xf32> -> vector<1x128xf32>
    %84 = arith.index_cast %c3_i32 : i32 to index
    %c0_33 = arith.constant 0 : index
    %85 = vector.load %arg8[%84, %c0_33] : memref<8x128xf32, #tpu.memory_space<vmem>>, vector<1x128xf32>
    %86 = arith.addf %83, %85 : vector<1x128xf32>
    %87 = arith.negf %86 : vector<1x128xf32>
    %88 = math.exp %87 : vector<1x128xf32>
    %cst_34 = arith.constant 1.000000e+00 : f32
    %89 = vector.broadcast %cst_34 : f32 to vector<1x128xf32>
    %90 = arith.addf %89, %88 : vector<1x128xf32>
    %91 = arith.divf %89, %90 : vector<1x128xf32>
    %92 = math.tanh %86 : vector<1x128xf32>
    %93 = vector.extract_strided_slice %91 {offsets = [0, 0], sizes = [1, 32], strides = [1, 1]} : vector<1x128xf32> to vector<1x32xf32>
    %94 = vector.extract_strided_slice %91 {offsets = [0, 32], sizes = [1, 32], strides = [1, 1]} : vector<1x128xf32> to vector<1x32xf32>
    %95 = vector.extract_strided_slice %92 {offsets = [0, 64], sizes = [1, 32], strides = [1, 1]} : vector<1x128xf32> to vector<1x32xf32>
    %96 = vector.extract_strided_slice %91 {offsets = [0, 96], sizes = [1, 32], strides = [1, 1]} : vector<1x128xf32> to vector<1x32xf32>
    %97 = arith.mulf %94, %77 : vector<1x32xf32>
    %98 = arith.mulf %93, %95 : vector<1x32xf32>
    %99 = arith.addf %97, %98 : vector<1x32xf32>
    %100 = math.tanh %99 : vector<1x32xf32>
    %101 = arith.mulf %96, %100 : vector<1x32xf32>
    %102 = arith.index_cast %c3_i32 : i32 to index
    %c0_35 = arith.constant 0 : index
    %103 = vector.load %arg9[%102, %c0_35] : memref<8x32xf32, #tpu.memory_space<vmem>>, vector<1x32xf32>
    tpu.vector_store %arg9[%102, %c0_35], %101 {strides = array<i32>} : memref<8x32xf32, #tpu.memory_space<vmem>>, vector<1x32xf32>,
    %c4_i32 = arith.constant 4 : i32
    %c0_36 = arith.constant 0 : index
    %c0_37 = arith.constant 0 : index
    %104 = vector.load %arg3[%c0_36, %c0_37] : memref<32x128xf32, #tpu.memory_space<vmem>>, vector<32x128xf32>
    %cst_38 = arith.constant dense<0.000000e+00> : vector<1x128xf32>
    %105 = tpu.matmul %101, %104, %cst_38 {dimension_numbers = #tpu.dot_dimension_numbers<[1], [0], [0], [1], [0, 0, 1, 1], [], []>} : vector<1x32xf32>, vector<32x128xf32>, vector<1x128xf32> -> vector<1x128xf32>
    %106 = arith.index_cast %c4_i32 : i32 to index
    %c0_39 = arith.constant 0 : index
    %107 = vector.load %arg8[%106, %c0_39] : memref<8x128xf32, #tpu.memory_space<vmem>>, vector<1x128xf32>
    %108 = arith.addf %105, %107 : vector<1x128xf32>
    %109 = arith.negf %108 : vector<1x128xf32>
    %110 = math.exp %109 : vector<1x128xf32>
    %cst_40 = arith.constant 1.000000e+00 : f32
    %111 = vector.broadcast %cst_40 : f32 to vector<1x128xf32>
    %112 = arith.addf %111, %110 : vector<1x128xf32>
    %113 = arith.divf %111, %112 : vector<1x128xf32>
    %114 = math.tanh %108 : vector<1x128xf32>
    %115 = vector.extract_strided_slice %113 {offsets = [0, 0], sizes = [1, 32], strides = [1, 1]} : vector<1x128xf32> to vector<1x32xf32>
    %116 = vector.extract_strided_slice %113 {offsets = [0, 32], sizes = [1, 32], strides = [1, 1]} : vector<1x128xf32> to vector<1x32xf32>
    %117 = vector.extract_strided_slice %114 {offsets = [0, 64], sizes = [1, 32], strides = [1, 1]} : vector<1x128xf32> to vector<1x32xf32>
    %118 = vector.extract_strided_slice %113 {offsets = [0, 96], sizes = [1, 32], strides = [1, 1]} : vector<1x128xf32> to vector<1x32xf32>
    %119 = arith.mulf %116, %99 : vector<1x32xf32>
    %120 = arith.mulf %115, %117 : vector<1x32xf32>
    %121 = arith.addf %119, %120 : vector<1x32xf32>
    %122 = math.tanh %121 : vector<1x32xf32>
    %123 = arith.mulf %118, %122 : vector<1x32xf32>
    %124 = arith.index_cast %c4_i32 : i32 to index
    %c0_41 = arith.constant 0 : index
    %125 = vector.load %arg9[%124, %c0_41] : memref<8x32xf32, #tpu.memory_space<vmem>>, vector<1x32xf32>
    tpu.vector_store %arg9[%124, %c0_41], %123 {strides = array<i32>} : memref<8x32xf32, #tpu.memory_space<vmem>>, vector<1x32xf32>,
    %c5_i32 = arith.constant 5 : i32
    %c0_42 = arith.constant 0 : index
    %c0_43 = arith.constant 0 : index
    %126 = vector.load %arg3[%c0_42, %c0_43] : memref<32x128xf32, #tpu.memory_space<vmem>>, vector<32x128xf32>
    %cst_44 = arith.constant dense<0.000000e+00> : vector<1x128xf32>
    %127 = tpu.matmul %123, %126, %cst_44 {dimension_numbers = #tpu.dot_dimension_numbers<[1], [0], [0], [1], [0, 0, 1, 1], [], []>} : vector<1x32xf32>, vector<32x128xf32>, vector<1x128xf32> -> vector<1x128xf32>
    %128 = arith.index_cast %c5_i32 : i32 to index
    %c0_45 = arith.constant 0 : index
    %129 = vector.load %arg8[%128, %c0_45] : memref<8x128xf32, #tpu.memory_space<vmem>>, vector<1x128xf32>
    %130 = arith.addf %127, %129 : vector<1x128xf32>
    %131 = arith.negf %130 : vector<1x128xf32>
    %132 = math.exp %131 : vector<1x128xf32>
    %cst_46 = arith.constant 1.000000e+00 : f32
    %133 = vector.broadcast %cst_46 : f32 to vector<1x128xf32>
    %134 = arith.addf %133, %132 : vector<1x128xf32>
    %135 = arith.divf %133, %134 : vector<1x128xf32>
    %136 = math.tanh %130 : vector<1x128xf32>
    %137 = vector.extract_strided_slice %135 {offsets = [0, 0], sizes = [1, 32], strides = [1, 1]} : vector<1x128xf32> to vector<1x32xf32>
    %138 = vector.extract_strided_slice %135 {offsets = [0, 32], sizes = [1, 32], strides = [1, 1]} : vector<1x128xf32> to vector<1x32xf32>
    %139 = vector.extract_strided_slice %136 {offsets = [0, 64], sizes = [1, 32], strides = [1, 1]} : vector<1x128xf32> to vector<1x32xf32>
    %140 = vector.extract_strided_slice %135 {offsets = [0, 96], sizes = [1, 32], strides = [1, 1]} : vector<1x128xf32> to vector<1x32xf32>
    %141 = arith.mulf %138, %121 : vector<1x32xf32>
    %142 = arith.mulf %137, %139 : vector<1x32xf32>
    %143 = arith.addf %141, %142 : vector<1x32xf32>
    %144 = math.tanh %143 : vector<1x32xf32>
    %145 = arith.mulf %140, %144 : vector<1x32xf32>
    %146 = arith.index_cast %c5_i32 : i32 to index
    %c0_47 = arith.constant 0 : index
    %147 = vector.load %arg9[%146, %c0_47] : memref<8x32xf32, #tpu.memory_space<vmem>>, vector<1x32xf32>
    tpu.vector_store %arg9[%146, %c0_47], %145 {strides = array<i32>} : memref<8x32xf32, #tpu.memory_space<vmem>>, vector<1x32xf32>,
    %c6_i32 = arith.constant 6 : i32
    %c0_48 = arith.constant 0 : index
    %c0_49 = arith.constant 0 : index
    %148 = vector.load %arg3[%c0_48, %c0_49] : memref<32x128xf32, #tpu.memory_space<vmem>>, vector<32x128xf32>
    %cst_50 = arith.constant dense<0.000000e+00> : vector<1x128xf32>
    %149 = tpu.matmul %145, %148, %cst_50 {dimension_numbers = #tpu.dot_dimension_numbers<[1], [0], [0], [1], [0, 0, 1, 1], [], []>} : vector<1x32xf32>, vector<32x128xf32>, vector<1x128xf32> -> vector<1x128xf32>
    %150 = arith.index_cast %c6_i32 : i32 to index
    %c0_51 = arith.constant 0 : index
    %151 = vector.load %arg8[%150, %c0_51] : memref<8x128xf32, #tpu.memory_space<vmem>>, vector<1x128xf32>
    %152 = arith.addf %149, %151 : vector<1x128xf32>
    %153 = arith.negf %152 : vector<1x128xf32>
    %154 = math.exp %153 : vector<1x128xf32>
    %cst_52 = arith.constant 1.000000e+00 : f32
    %155 = vector.broadcast %cst_52 : f32 to vector<1x128xf32>
    %156 = arith.addf %155, %154 : vector<1x128xf32>
    %157 = arith.divf %155, %156 : vector<1x128xf32>
    %158 = math.tanh %152 : vector<1x128xf32>
    %159 = vector.extract_strided_slice %157 {offsets = [0, 0], sizes = [1, 32], strides = [1, 1]} : vector<1x128xf32> to vector<1x32xf32>
    %160 = vector.extract_strided_slice %157 {offsets = [0, 32], sizes = [1, 32], strides = [1, 1]} : vector<1x128xf32> to vector<1x32xf32>
    %161 = vector.extract_strided_slice %158 {offsets = [0, 64], sizes = [1, 32], strides = [1, 1]} : vector<1x128xf32> to vector<1x32xf32>
    %162 = vector.extract_strided_slice %157 {offsets = [0, 96], sizes = [1, 32], strides = [1, 1]} : vector<1x128xf32> to vector<1x32xf32>
    %163 = arith.mulf %160, %143 : vector<1x32xf32>
    %164 = arith.mulf %159, %161 : vector<1x32xf32>
    %165 = arith.addf %163, %164 : vector<1x32xf32>
    %166 = math.tanh %165 : vector<1x32xf32>
    %167 = arith.mulf %162, %166 : vector<1x32xf32>
    %168 = arith.index_cast %c6_i32 : i32 to index
    %c0_53 = arith.constant 0 : index
    %169 = vector.load %arg9[%168, %c0_53] : memref<8x32xf32, #tpu.memory_space<vmem>>, vector<1x32xf32>
    tpu.vector_store %arg9[%168, %c0_53], %167 {strides = array<i32>} : memref<8x32xf32, #tpu.memory_space<vmem>>, vector<1x32xf32>,
    %c7_i32 = arith.constant 7 : i32
    %c0_54 = arith.constant 0 : index
    %c0_55 = arith.constant 0 : index
    %170 = vector.load %arg3[%c0_54, %c0_55] : memref<32x128xf32, #tpu.memory_space<vmem>>, vector<32x128xf32>
    %cst_56 = arith.constant dense<0.000000e+00> : vector<1x128xf32>
    %171 = tpu.matmul %167, %170, %cst_56 {dimension_numbers = #tpu.dot_dimension_numbers<[1], [0], [0], [1], [0, 0, 1, 1], [], []>} : vector<1x32xf32>, vector<32x128xf32>, vector<1x128xf32> -> vector<1x128xf32>
    %172 = arith.index_cast %c7_i32 : i32 to index
    %c0_57 = arith.constant 0 : index
    %173 = vector.load %arg8[%172, %c0_57] : memref<8x128xf32, #tpu.memory_space<vmem>>, vector<1x128xf32>
    %174 = arith.addf %171, %173 : vector<1x128xf32>
    %175 = arith.negf %174 : vector<1x128xf32>
    %176 = math.exp %175 : vector<1x128xf32>
    %cst_58 = arith.constant 1.000000e+00 : f32
    %177 = vector.broadcast %cst_58 : f32 to vector<1x128xf32>
    %178 = arith.addf %177, %176 : vector<1x128xf32>
    %179 = arith.divf %177, %178 : vector<1x128xf32>
    %180 = math.tanh %174 : vector<1x128xf32>
    %181 = vector.extract_strided_slice %179 {offsets = [0, 0], sizes = [1, 32], strides = [1, 1]} : vector<1x128xf32> to vector<1x32xf32>
    %182 = vector.extract_strided_slice %179 {offsets = [0, 32], sizes = [1, 32], strides = [1, 1]} : vector<1x128xf32> to vector<1x32xf32>
    %183 = vector.extract_strided_slice %180 {offsets = [0, 64], sizes = [1, 32], strides = [1, 1]} : vector<1x128xf32> to vector<1x32xf32>
    %184 = vector.extract_strided_slice %179 {offsets = [0, 96], sizes = [1, 32], strides = [1, 1]} : vector<1x128xf32> to vector<1x32xf32>
    %185 = arith.mulf %182, %165 : vector<1x32xf32>
    %186 = arith.mulf %181, %183 : vector<1x32xf32>
    %187 = arith.addf %185, %186 : vector<1x32xf32>
    %188 = math.tanh %187 : vector<1x32xf32>
    %189 = arith.mulf %184, %188 : vector<1x32xf32>
    %190 = arith.index_cast %c7_i32 : i32 to index
    %c0_59 = arith.constant 0 : index
    %191 = vector.load %arg9[%190, %c0_59] : memref<8x32xf32, #tpu.memory_space<vmem>>, vector<1x32xf32>
    tpu.vector_store %arg9[%190, %c0_59], %189 {strides = array<i32>} : memref<8x32xf32, #tpu.memory_space<vmem>>, vector<1x32xf32>,
    %c8_i32 = arith.constant 8 : i32
    %c0_60 = arith.constant 0 : index
    %c0_61 = arith.constant 0 : index
    %192 = vector.load %arg9[%c0_60, %c0_61] : memref<8x32xf32, #tpu.memory_space<vmem>>, vector<8x32xf32>
    %c0_62 = arith.constant 0 : index
    %c0_63 = arith.constant 0 : index
    %193 = vector.load %arg5[%c0_62, %c0_63] : memref<32x8xf32, #tpu.memory_space<vmem>>, vector<32x8xf32>
    %cst_64 = arith.constant dense<0.000000e+00> : vector<8x8xf32>
    %194 = tpu.matmul %192, %193, %cst_64 {dimension_numbers = #tpu.dot_dimension_numbers<[1], [0], [0], [1], [0, 0, 1, 1], [], []>} : vector<8x32xf32>, vector<32x8xf32>, vector<8x8xf32> -> vector<8x8xf32>
    %c0_65 = arith.constant 0 : index
    %c0_66 = arith.constant 0 : index
    %195 = vector.load %arg6[%c0_65, %c0_66] : memref<1x8xf32, #tpu.memory_space<vmem>>, vector<1x8xf32>
    %196 = vector.broadcast %195 : vector<1x8xf32> to vector<8x8xf32>
    %197 = arith.addf %194, %196 : vector<8x8xf32>
    %cst_67 = arith.constant dense<0xFF800000> : vector<8xf32>
    %198 = vector.multi_reduction <maximumf>, %197, %cst_67 [1] : vector<8x8xf32> to vector<8xf32>
    %199 = vector.shape_cast %198 : vector<8xf32> to vector<8x1xf32>
    %200 = vector.broadcast %199 : vector<8x1xf32> to vector<8x8xf32>
    %201 = arith.subf %197, %200 : vector<8x8xf32>
    %202 = math.exp %201 : vector<8x8xf32>
    %cst_68 = arith.constant dense<0.000000e+00> : vector<8xf32>
    %203 = vector.multi_reduction <add>, %202, %cst_68 [1] : vector<8x8xf32> to vector<8xf32>
    %204 = vector.shape_cast %203 : vector<8xf32> to vector<8x1xf32>
    %205 = math.log %204 : vector<8x1xf32>
    %206 = vector.broadcast %205 : vector<8x1xf32> to vector<8x8xf32>
    %207 = arith.subf %201, %206 : vector<8x8xf32>
    %c0_69 = arith.constant 0 : index
    %c0_70 = arith.constant 0 : index
    %208 = vector.load %arg7[%c0_69, %c0_70] : memref<8x8xf32, #tpu.memory_space<vmem>>, vector<8x8xf32>
    tpu.vector_store %arg7[%c0_69, %c0_70], %207 {strides = array<i32>} : memref<8x8xf32, #tpu.memory_space<vmem>>, vector<8x8xf32>,
    return
  }
}

</mosaic_0001>

<bundles_post_ra>
// kernel: tpu_custom_call.1
= control target key start
LH: loop header
LB: loop body
LE: loop exit
PB: predicated region body
PF: predicated region fallthrough
CT: control target
= control target key end

     0   :  { %vm43_vm0 = vcmask 1043456   ;;  %v837_v3 = vmov 0   ;;  %s984_s0 = inlined_call_operand.vmem [shape: s32[8,1], index: 0, kind: input, shape index: {}]   ;;  %s985_s1 = inlined_call_operand.vmem [shape: f32[20,16], index: 1, kind: input, shape index: {}]   ;;  %s986_s2 = inlined_call_operand.vmem [shape: f32[16,128], index: 2, kind: input, shape index: {}]   ;;  %s987_s3 = inlined_call_operand.vmem [shape: f32[32,128], index: 3, kind: input, shape index: {}]   ;;  %s988_s4 = inlined_call_operand.vmem [shape: f32[1,128], index: 4, kind: input, shape index: {}]   ;;  %s989_s5 = inlined_call_operand.vmem [shape: f32[32,8], index: 5, kind: input, shape index: {}]   ;;  %s990_s6 = inlined_call_operand.vmem [shape: f32[1,8], index: 6, kind: input, shape index: {}]   ;;  %s991_s7 = inlined_call_operand.hbm [shape: f32[8,8], index: 7, kind: output, shape index: {}]  }
   0x1   :  { %v27_v0 = vld [vmem:[%s984_s0] sm:$0xff]  ;;  %v38_v1 = vld [vmem:[%s985_s1 + $0x10] sm:$0xf]  ;;  %v37_v2 = vld [vmem:[%s985_s1 + $0x8] sm:$0xff]  ;;  %740 = vset.pattern.permute.xlu0 %v837_v3 }
   0x2   :  { %716 = vmatpush.msk.msra.mxu0 %vm43_vm0, %v38_v1  ;;  %31 = vperm.xlu0 %740, %v27_v0  }
   0x3   :  { %12 = vsyncpa [#allocation5], 0  ;;  %v36_v4 = vld [vmem:[%s985_s1] sm:$0xff]  ;;  %v68_v5 = vld [vmem:[%s986_s2 + $0x8] sm:$0xff]  ;;  %v28_v7 = vlaneseq  ;;  %vm39_vm1 = vcmask 162816   ;;  %v838_v10 = vmov 0.0  }
   0x4   :  { %61 = vmatpush.msra.mxu0 %v37_v2  ;;  %v101_v6 = vld [vmem:[%s987_s3 + $0x18] sm:$0xff]  ;;  %91 = vmatpush.msra.mxu1 %v68_v5  ;;  %v67_v12 = vld [vmem:[%s986_s2] sm:$0xff]  ;;  %v100_v13 = vld [vmem:[%s987_s3 + $0x10] sm:$0xff]  ;;  %vm73_vm3 = vcmask 130048   ;;  %s839_s19 = smov 64   ;;  %vm168_vm8 = vcmask 253952  }
   0x5   :  { %119 = vmatpush.msra.mxu2 %v101_v6  ;;  %189 = vmatpush.msra.mxu3 %v101_v6  ;;  %v29_v8 = vand.u32 127, %v28_v7  ;;  %v99_v14 = vld [vmem:[%s987_s3 + $0x8] sm:$0xff]  ;;  %v98_v15 = vld [vmem:[%s987_s3] sm:$0xff]  ;;  %vm103_vm9 = vcmask 261120   ;;  %s706_s0 = sshll.u32 %s991_s7, 4  ;;  %s707_s0 = int_to_ptr.hbm [resolvable:$true] %s706_s0 }
   0x6   :  { %62 = vmatpush.msra.mxu0 %v36_v4  ;;  %92 = vmatpush.msra.mxu1 %v67_v12  ;;  %v741_v17 = vld [vmem:[%s988_s4] ss:$0 sm:$0xff]  ;;  %s840_s4 = smov 32  }
   0x7   :  { %120 = vmatpush.msra.mxu2 %v100_v13  ;;  %190 = vmatpush.msra.mxu3 %v100_v13 }
   0x8   :  { %327 = vmatpush.msrb.mxu0 %v101_v6  ;;  %258 = vmatpush.msrb.mxu1 %v101_v6 }
   0x9   :  { %121 = vmatpush.msra.mxu2 %v99_v14  ;;  %191 = vmatpush.msra.mxu3 %v99_v14 }
   0xa   :  { %328 = vmatpush.msrb.mxu0 %v100_v13  ;;  %259 = vmatpush.msrb.mxu1 %v100_v13 }
   0xb   :  { %122 = vmatpush.msra.mxu2 %v98_v15  ;;  %192 = vmatpush.msra.mxu3 %v98_v15 }
   0xc   :  { %329 = vmatpush.msrb.mxu0 %v99_v14  ;;  %123 = vmatmul.f32.vlgmr.msra.gmra.mxu2 %v838_v10 }
   0xd   :  { %260 = vmatpush.msrb.mxu1 %v99_v14  ;;  %396 = vmatpush.msrb.mxu2 %v101_v6 }
   0xe   :  { %330 = vmatpush.msrb.mxu0 %v98_v15  ;;  %465 = vmatpush.msrb.mxu3 %v101_v6 }
   0xf   :  { %261 = vmatpush.msrb.mxu1 %v98_v15  ;;  %397 = vmatpush.msrb.mxu2 %v100_v13 }
  0x10   :  { %466 = vmatpush.msrb.mxu3 %v100_v13 }
  0x11   :  { %398 = vmatpush.msrb.mxu2 %v99_v14 }
  0x12   :  { %467 = vmatpush.msrb.mxu3 %v99_v14 }
  0x13   :  { %399 = vmatpush.msrb.mxu2 %v98_v15 }
  0x14   :  { %468 = vmatpush.msrb.mxu3 %v98_v15 }
  0x74   :  { %v32_v9 = vpop.permute.xlu0 %31 }
  0x75   :  { %vm33_vm2 = vcmp.eq.s32.totalorder %v29_v8, %v32_v9 }
  0x76   :  { %v715_v11 = vsel %vm33_vm2, 1.0, %v838_v10 }
  0x77   :  { %717 = vmatmul.msk.f32.vlgmr.msra.gmra.mxu0 %vm39_vm1, %v715_v11 }
  0x78   :  { %603 = vmatpush.msra.mxu0 %v101_v6 }
  0x7a   :  { %604 = vmatpush.msra.mxu0 %v100_v13 }
  0x7c   :  { %605 = vmatpush.msra.mxu0 %v99_v14 }
  0x7e   :  { %606 = vmatpush.msra.mxu0 %v98_v15 }
  0x8f   :  { %v124_v20 = vpop.f32.mrf.mxu2 }
  0xf4   :  { %v64_v16 = vpop.f32.mrf.mxu0 }
  0xf5   :  { %718 = vmatmul.msk.f32.vlgmr.msra.gmra.mxu1 %vm73_vm3, %v64_v16 }
  0xf6   :  { %534 = vmatpush.msra.mxu1 %v101_v6 }
  0xf8   :  { %535 = vmatpush.msra.mxu1 %v100_v13 }
  0xfa   :  { %536 = vmatpush.msra.mxu1 %v99_v14 }
  0xfc   :  { %537 = vmatpush.msra.mxu1 %v98_v15 }
 0x172   :  { %v94_v18 = vpop.f32.mrf.mxu1 }
 0x173   :  { %v95_v19 = vadd.f32 %v741_v17, %v94_v18 }
 0x175   :  { %97 = vst [vmem:[#allocation2] sm:$0xff] %v95_v19 }
 0x17c   :  { %v102_v21 = vld [vmem:[#allocation2] sm:$0x1]  ;;  %v174_v46 = vld [vmem:[#allocation2 + $0x1] sm:$0x1]  ;;  %v243_v8 = vld [vmem:[#allocation2 + $0x2] sm:$0x1] }
 0x17d   :  { %v125_v22 = vadd.f32 %v124_v20, %v102_v21 }
 0x17f   :  { %743 = vtanh.f32 %v125_v22  ;;  %v719_v24 = vmul.f32 -1.442695, %v125_v22 }
 0x181   :  { %745 = vpow2.f32 %v719_v24 }
 0x185   :  { %v744_v23 = vpop.eup %743 }
 0x186   :  { %149 = vrot.lane.b32.xlu0 %v744_v23, %s839_s19 }
 0x187   :  { %v746_v25 = vpop.eup %745 }
 0x188   :  { %v130_v26 = vadd.f32 1.0, %v746_v25 }
 0x18a   :  { %747 = vrcp.f32 %v130_v26  ;;  %v142_v32 = vand.u32 2147483648, %v130_v26  ;;  %vm136_vm5 = vweird.f32 %v130_v26  ;;  %v140_v33 = vand.u32 2147483647, %v130_v26 }
 0x18c   :  { %v143_v35 = vor.u32 1.1754944e-38, %v142_v32  ;;  %vm141_vm7 = vcmp.eq.f32.partialorder %v140_v33, 8.507059e+37 }
 0x190   :  { %v748_v27 = vpop.eup %747 }
 0x191   :  { %v132_v28 = vmul.f32 %v748_v27, %v130_v26  ;;  %vm137_vm4 = vweird.f32 %v748_v27 }
 0x192   :  { %vm138_vm6 = vmor %vm136_vm5, %vm137_vm4 }
 0x193   :  { %v133_v29 = vsub.f32 1.0, %v132_v28 }
 0x195   :  { %v134_v30 = vmul.f32 %v748_v27, %v133_v29 }
 0x197   :  { %v135_v31 = vadd.f32 %v748_v27, %v134_v30 }
 0x199   :  { %v139_v34 = vsel %vm138_vm6, %v748_v27, %v135_v31 }
 0x19a   :  { %v144_v37 = vsel %vm141_vm7, %v143_v35, %v139_v34  ;;  %v312_v34 = vld [vmem:[#allocation2 + $0x3] sm:$0x1] }
 0x19b   :  { %v147_v39 = vmul.f32 0.0, %v144_v37 }
 0x1f8   :  { %v150_v36 = vpop.permute.xlu0 %149 }
 0x1f9   :  { %v152_v38 = vmul.f32 %v150_v36, %v144_v37 }
 0x1fb   :  { %154 = vrot.lane.b32.xlu1 %v152_v38, %s840_s4 }
 0x26d   :  { %v155_v40 = vpop.permute.xlu1 %154 }
 0x26e   :  { %v157_v41 = vadd.f32 %v155_v40, %v147_v39 }
 0x270   :  { %749 = vtanh.f32 %v157_v41 }
 0x276   :  { %v750_v42 = vpop.eup %749 }
 0x277   :  { %160 = vrot.lane.b32.xlu1 %v750_v42, %s839_s19 }
 0x2e9   :  { %v161_v43 = vpop.permute.xlu1 %160 }
 0x2ea   :  { %v163_v44 = vmul.f32 %v161_v43, %v144_v37 }
 0x2ec   :  { %165 = vrot.lane.b32.xlu2 %v163_v44, %s840_s4 }
 0x346   :  { %v166_v45 = vpop.permute.xlu2 %165 }
 0x347   :  { %169 = vst.msk [vmem:[#allocation3] sm:$0x1] %vm168_vm8, %v166_v45  ;;  %720 = vmatmul.msk.f32.vlgmr.msra.gmra.mxu3 %vm103_vm9, %v166_v45 }
 0x3ca   :  { %v194_v47 = vpop.f32.mrf.mxu3 }
 0x3cb   :  { %v195_v48 = vadd.f32 %v194_v47, %v174_v46 }
 0x3cd   :  { %751 = vtanh.f32 %v195_v48  ;;  %v721_v50 = vmul.f32 -1.442695, %v195_v48 }
 0x3cf   :  { %753 = vpow2.f32 %v721_v50 }
 0x3d3   :  { %v752_v49 = vpop.eup %751 }
 0x3d4   :  { %219 = vrot.lane.b32.xlu2 %v752_v49, %s839_s19 }
 0x3d5   :  { %v754_v51 = vpop.eup %753 }
 0x3d6   :  { %v200_v52 = vadd.f32 1.0, %v754_v51 }
 0x3d8   :  { %755 = vrcp.f32 %v200_v52  ;;  %v212_v58 = vand.u32 2147483648, %v200_v52  ;;  %vm206_vm11 = vweird.f32 %v200_v52  ;;  %v210_v59 = vand.u32 2147483647, %v200_v52 }
 0x3da   :  { %v213_v61 = vor.u32 1.1754944e-38, %v212_v58  ;;  %vm211_vm13 = vcmp.eq.f32.partialorder %v210_v59, 8.507059e+37 }
 0x3de   :  { %v756_v53 = vpop.eup %755 }
 0x3df   :  { %v202_v54 = vmul.f32 %v756_v53, %v200_v52  ;;  %vm207_vm10 = vweird.f32 %v756_v53 }
 0x3e0   :  { %vm208_vm12 = vmor %vm206_vm11, %vm207_vm10 }
 0x3e1   :  { %v203_v55 = vsub.f32 1.0, %v202_v54 }
 0x3e3   :  { %v204_v56 = vmul.f32 %v756_v53, %v203_v55 }
 0x3e5   :  { %v205_v57 = vadd.f32 %v756_v53, %v204_v56 }
 0x3e7   :  { %v209_v60 = vsel %vm208_vm12, %v756_v53, %v205_v57 }
 0x3e8   :  { %v214_v63 = vsel %vm211_vm13, %v213_v61, %v209_v60  ;;  %v381_v60 = vld [vmem:[#allocation2 + $0x4] sm:$0x1] }
 0x3e9   :  { %v217_v1 = vmul.f32 %v214_v63, %v157_v41 }
 0x42e   :  { %v220_v62 = vpop.permute.xlu2 %219 }
 0x42f   :  { %v222_v0 = vmul.f32 %v220_v62, %v214_v63 }
 0x431   :  { %224 = vrot.lane.b32.xlu0 %v222_v0, %s840_s4 }
 0x4a3   :  { %v225_v2 = vpop.permute.xlu0 %224 }
 0x4a4   :  { %v227_v3 = vadd.f32 %v225_v2, %v217_v1 }
 0x4a6   :  { %757 = vtanh.f32 %v227_v3 }
 0x4ac   :  { %v758_v4 = vpop.eup %757 }
 0x4ad   :  { %230 = vrot.lane.b32.xlu1 %v758_v4, %s839_s19 }
 0x51f   :  { %v231_v5 = vpop.permute.xlu1 %230 }
 0x520   :  { %v233_v6 = vmul.f32 %v231_v5, %v214_v63 }
 0x522   :  { %235 = vrot.lane.b32.xlu2 %v233_v6, %s840_s4 }
 0x57c   :  { %v236_v7 = vpop.permute.xlu2 %235 }
 0x57d   :  { %238 = vst.msk [vmem:[#allocation3 + $0x1] sm:$0x1] %vm168_vm8, %v236_v7  ;;  %722 = vmatmul.msk.f32.vlgmr.msrb.gmra.mxu1 %vm103_vm9, %v236_v7 }
 0x5fa   :  { %v263_v9 = vpop.f32.mrf.mxu1 }
 0x5fb   :  { %v264_v10 = vadd.f32 %v263_v9, %v243_v8 }
 0x5fd   :  { %759 = vtanh.f32 %v264_v10  ;;  %v723_v12 = vmul.f32 -1.442695, %v264_v10 }
 0x5ff   :  { %761 = vpow2.f32 %v723_v12 }
 0x603   :  { %v760_v11 = vpop.eup %759 }
 0x604   :  { %288 = vrot.lane.b32.xlu0 %v760_v11, %s839_s19 }
 0x605   :  { %v762_v13 = vpop.eup %761 }
 0x606   :  { %v269_v14 = vadd.f32 1.0, %v762_v13 }
 0x608   :  { %763 = vrcp.f32 %v269_v14  ;;  %v281_v20 = vand.u32 2147483648, %v269_v14  ;;  %vm275_vm15 = vweird.f32 %v269_v14  ;;  %v279_v21 = vand.u32 2147483647, %v269_v14 }
 0x60a   :  { %v282_v23 = vor.u32 1.1754944e-38, %v281_v20  ;;  %vm280_vm1 = vcmp.eq.f32.partialorder %v279_v21, 8.507059e+37 }
 0x60e   :  { %v764_v15 = vpop.eup %763 }
 0x60f   :  { %v271_v16 = vmul.f32 %v764_v15, %v269_v14  ;;  %vm276_vm14 = vweird.f32 %v764_v15 }
 0x610   :  { %vm277_vm0 = vmor %vm275_vm15, %vm276_vm14 }
 0x611   :  { %v272_v17 = vsub.f32 1.0, %v271_v16 }
 0x613   :  { %v273_v18 = vmul.f32 %v764_v15, %v272_v17 }
 0x615   :  { %v274_v19 = vadd.f32 %v764_v15, %v273_v18 }
 0x617   :  { %v278_v22 = vsel %vm277_vm0, %v764_v15, %v274_v19 }
 0x618   :  { %v283_v25 = vsel %vm280_vm1, %v282_v23, %v278_v22  ;;  %v450_v22 = vld [vmem:[#allocation2 + $0x5] sm:$0x1] }
 0x619   :  { %v286_v27 = vmul.f32 %v283_v25, %v227_v3 }
 0x676   :  { %v289_v24 = vpop.permute.xlu0 %288 }
 0x677   :  { %v291_v26 = vmul.f32 %v289_v24, %v283_v25 }
 0x679   :  { %293 = vrot.lane.b32.xlu1 %v291_v26, %s840_s4 }
 0x6eb   :  { %v294_v28 = vpop.permute.xlu1 %293 }
 0x6ec   :  { %v296_v29 = vadd.f32 %v294_v28, %v286_v27 }
 0x6ee   :  { %765 = vtanh.f32 %v296_v29 }
 0x6f4   :  { %v766_v30 = vpop.eup %765 }
 0x6f5   :  { %299 = vrot.lane.b32.xlu2 %v766_v30, %s839_s19 }
 0x74f   :  { %v300_v31 = vpop.permute.xlu2 %299 }
 0x750   :  { %v302_v32 = vmul.f32 %v300_v31, %v283_v25 }
 0x752   :  { %304 = vrot.lane.b32.xlu0 %v302_v32, %s840_s4 }
 0x7c4   :  { %v305_v33 = vpop.permute.xlu0 %304 }
 0x7c5   :  { %307 = vst.msk [vmem:[#allocation3 + $0x2] sm:$0x1] %vm168_vm8, %v305_v33  ;;  %724 = vmatmul.msk.f32.vlgmr.msrb.gmra.mxu0 %vm103_vm9, %v305_v33 }
 0x842   :  { %v332_v35 = vpop.f32.mrf.mxu0 }
 0x843   :  { %v333_v36 = vadd.f32 %v332_v35, %v312_v34 }
 0x845   :  { %767 = vtanh.f32 %v333_v36  ;;  %v725_v38 = vmul.f32 -1.442695, %v333_v36 }
 0x847   :  { %769 = vpow2.f32 %v725_v38 }
 0x84b   :  { %v768_v37 = vpop.eup %767 }
 0x84c   :  { %357 = vrot.lane.b32.xlu1 %v768_v37, %s839_s19 }
 0x84d   :  { %v770_v39 = vpop.eup %769 }
 0x84e   :  { %v338_v40 = vadd.f32 1.0, %v770_v39 }
 0x850   :  { %771 = vrcp.f32 %v338_v40  ;;  %v350_v46 = vand.u32 2147483648, %v338_v40  ;;  %vm344_vm3 = vweird.f32 %v338_v40  ;;  %v348_v47 = vand.u32 2147483647, %v338_v40 }
 0x852   :  { %v351_v49 = vor.u32 1.1754944e-38, %v350_v46  ;;  %vm349_vm5 = vcmp.eq.f32.partialorder %v348_v47, 8.507059e+37 }
 0x856   :  { %v772_v41 = vpop.eup %771 }
 0x857   :  { %v340_v42 = vmul.f32 %v772_v41, %v338_v40  ;;  %vm345_vm2 = vweird.f32 %v772_v41 }
 0x858   :  { %vm346_vm4 = vmor %vm344_vm3, %vm345_vm2 }
 0x859   :  { %v341_v43 = vsub.f32 1.0, %v340_v42 }
 0x85b   :  { %v342_v44 = vmul.f32 %v772_v41, %v341_v43 }
 0x85d   :  { %v343_v45 = vadd.f32 %v772_v41, %v342_v44 }
 0x85f   :  { %v347_v48 = vsel %vm346_vm4, %v772_v41, %v343_v45 }
 0x860   :  { %v352_v51 = vsel %vm349_vm5, %v351_v49, %v347_v48  ;;  %v519_v48 = vld [vmem:[#allocation2 + $0x6] sm:$0x1] }
 0x861   :  { %v355_v53 = vmul.f32 %v352_v51, %v296_v29 }
 0x8be   :  { %v358_v50 = vpop.permute.xlu1 %357 }
 0x8bf   :  { %v360_v52 = vmul.f32 %v358_v50, %v352_v51 }
 0x8c1   :  { %362 = vrot.lane.b32.xlu2 %v360_v52, %s840_s4 }
 0x91b   :  { %v363_v54 = vpop.permute.xlu2 %362 }
 0x91c   :  { %v365_v55 = vadd.f32 %v363_v54, %v355_v53 }
 0x91e   :  { %773 = vtanh.f32 %v365_v55 }
 0x924   :  { %v774_v56 = vpop.eup %773 }
 0x925   :  { %368 = vrot.lane.b32.xlu0 %v774_v56, %s839_s19 }
 0x997   :  { %v369_v57 = vpop.permute.xlu0 %368 }
 0x998   :  { %v371_v58 = vmul.f32 %v369_v57, %v352_v51 }
 0x99a   :  { %373 = vrot.lane.b32.xlu1 %v371_v58, %s840_s4 }
 0xa0c   :  { %v374_v59 = vpop.permute.xlu1 %373 }
 0xa0d   :  { %376 = vst.msk [vmem:[#allocation3 + $0x3] sm:$0x1] %vm168_vm8, %v374_v59  ;;  %726 = vmatmul.msk.f32.vlgmr.msrb.gmra.mxu2 %vm103_vm9, %v374_v59 }
 0xa90   :  { %v401_v61 = vpop.f32.mrf.mxu2 }
 0xa91   :  { %v402_v62 = vadd.f32 %v401_v61, %v381_v60 }
 0xa93   :  { %775 = vtanh.f32 %v402_v62  ;;  %v727_v0 = vmul.f32 -1.442695, %v402_v62 }
 0xa95   :  { %777 = vpow2.f32 %v727_v0 }
 0xa99   :  { %v776_v63 = vpop.eup %775 }
 0xa9a   :  { %426 = vrot.lane.b32.xlu2 %v776_v63, %s839_s19 }
 0xa9b   :  { %v778_v1 = vpop.eup %777 }
 0xa9c   :  { %v407_v2 = vadd.f32 1.0, %v778_v1 }
 0xa9e   :  { %779 = vrcp.f32 %v407_v2  ;;  %v419_v8 = vand.u32 2147483648, %v407_v2  ;;  %vm413_vm7 = vweird.f32 %v407_v2  ;;  %v417_v9 = vand.u32 2147483647, %v407_v2 }
 0xaa0   :  { %v420_v11 = vor.u32 1.1754944e-38, %v419_v8  ;;  %vm418_vm11 = vcmp.eq.f32.partialorder %v417_v9, 8.507059e+37 }
 0xaa4   :  { %v780_v3 = vpop.eup %779 }
 0xaa5   :  { %v409_v4 = vmul.f32 %v780_v3, %v407_v2  ;;  %vm414_vm6 = vweird.f32 %v780_v3 }
 0xaa6   :  { %vm415_vm10 = vmor %vm413_vm7, %vm414_vm6 }
 0xaa7   :  { %v410_v5 = vsub.f32 1.0, %v409_v4 }
 0xaa9   :  { %v411_v6 = vmul.f32 %v780_v3, %v410_v5 }
 0xaab   :  { %v412_v7 = vadd.f32 %v780_v3, %v411_v6 }
 0xaad   :  { %v416_v10 = vsel %vm415_vm10, %v780_v3, %v412_v7  ;;  %vm685_vm10 = vcmask 64512  }
 0xaae   :  { %v421_v13 = vsel %vm418_vm11, %v420_v11, %v416_v10  ;;  %v588_v10 = vld [vmem:[#allocation2 + $0x7] sm:$0x1] }
 0xaaf   :  { %v424_v15 = vmul.f32 %v421_v13, %v365_v55 }
 0xaf4   :  { %v427_v12 = vpop.permute.xlu2 %426 }
 0xaf5   :  { %v429_v14 = vmul.f32 %v427_v12, %v421_v13 }
 0xaf7   :  { %431 = vrot.lane.b32.xlu0 %v429_v14, %s840_s4 }
 0xb69   :  { %v432_v16 = vpop.permute.xlu0 %431 }
 0xb6a   :  { %v434_v17 = vadd.f32 %v432_v16, %v424_v15 }
 0xb6c   :  { %781 = vtanh.f32 %v434_v17 }
 0xb72   :  { %v782_v18 = vpop.eup %781 }
 0xb73   :  { %437 = vrot.lane.b32.xlu1 %v782_v18, %s839_s19 }
 0xbe5   :  { %v438_v19 = vpop.permute.xlu1 %437 }
 0xbe6   :  { %v440_v20 = vmul.f32 %v438_v19, %v421_v13 }
 0xbe8   :  { %442 = vrot.lane.b32.xlu2 %v440_v20, %s840_s4 }
 0xc42   :  { %v443_v21 = vpop.permute.xlu2 %442 }
 0xc43   :  { %445 = vst.msk [vmem:[#allocation3 + $0x4] sm:$0x1] %vm168_vm8, %v443_v21  ;;  %728 = vmatmul.msk.f32.vlgmr.msrb.gmra.mxu3 %vm103_vm9, %v443_v21 }
 0xcc6   :  { %v470_v23 = vpop.f32.mrf.mxu3 }
 0xcc7   :  { %v471_v24 = vadd.f32 %v470_v23, %v450_v22 }
 0xcc9   :  { %783 = vtanh.f32 %v471_v24  ;;  %v729_v26 = vmul.f32 -1.442695, %v471_v24 }
 0xccb   :  { %785 = vpow2.f32 %v729_v26 }
 0xccf   :  { %v784_v25 = vpop.eup %783 }
 0xcd0   :  { %495 = vrot.lane.b32.xlu0 %v784_v25, %s839_s19 }
 0xcd1   :  { %v786_v27 = vpop.eup %785 }
 0xcd2   :  { %v476_v28 = vadd.f32 1.0, %v786_v27 }
 0xcd4   :  { %787 = vrcp.f32 %v476_v28  ;;  %v488_v34 = vand.u32 2147483648, %v476_v28  ;;  %vm482_vm13 = vweird.f32 %v476_v28  ;;  %v486_v35 = vand.u32 2147483647, %v476_v28 }
 0xcd6   :  { %v489_v37 = vor.u32 1.1754944e-38, %v488_v34  ;;  %vm487_vm15 = vcmp.eq.f32.partialorder %v486_v35, 8.507059e+37  ;;  %v657_v35 = vld [vmem:[%s989_s5 + $0x18] sm:$0xff] }
 0xcd7   :  { %677 = vmatpush.msra.mxu2 %v657_v35 }
 0xcda   :  { %v788_v29 = vpop.eup %787 }
 0xcdb   :  { %v478_v30 = vmul.f32 %v788_v29, %v476_v28  ;;  %vm483_vm12 = vweird.f32 %v788_v29 }
 0xcdc   :  { %vm484_vm14 = vmor %vm482_vm13, %vm483_vm12 }
 0xcdd   :  { %v479_v31 = vsub.f32 1.0, %v478_v30 }
 0xcdf   :  { %v480_v32 = vmul.f32 %v788_v29, %v479_v31 }
 0xce1   :  { %v481_v33 = vadd.f32 %v788_v29, %v480_v32 }
 0xce3   :  { %v485_v36 = vsel %vm484_vm14, %v788_v29, %v481_v33 }
 0xce4   :  { %v490_v39 = vsel %vm487_vm15, %v489_v37, %v485_v36  ;;  %v656_v36 = vld [vmem:[%s989_s5 + $0x10] sm:$0xff]  ;;  %v655_v37 = vld [vmem:[%s989_s5 + $0x8] sm:$0xff] }
 0xce5   :  { %v493_v41 = vmul.f32 %v490_v39, %v434_v17  ;;  %678 = vmatpush.msra.mxu2 %v656_v36 }
 0xce7   :  { %679 = vmatpush.msra.mxu2 %v655_v37 }
 0xd42   :  { %v496_v38 = vpop.permute.xlu0 %495 }
 0xd43   :  { %v498_v40 = vmul.f32 %v496_v38, %v490_v39  ;;  %v654_v38 = vld [vmem:[%s989_s5] sm:$0xff]  ;;  %s841_s5 = smov [#allocation4]  }
 0xd44   :  { %680 = vmatpush.msra.mxu2 %v654_v38  ;;  %s704_s30 = sshll.u32 %s841_s5, 4  ;;  %s705_s30 = int_to_ptr.vmem [resolvable:$true] %s704_s30 }
 0xd45   :  { %500 = vrot.lane.b32.xlu1 %v498_v40, %s840_s4 }
 0xdb7   :  { %v501_v42 = vpop.permute.xlu1 %500 }
 0xdb8   :  { %v503_v43 = vadd.f32 %v501_v42, %v493_v41  ;;  %v742_v41 = vld [vmem:[%s990_s6] ss:$0 sm:$0xff] }
 0xdba   :  { %789 = vtanh.f32 %v503_v43 }
 0xdc0   :  { %v790_v44 = vpop.eup %789 }
 0xdc1   :  { %506 = vrot.lane.b32.xlu2 %v790_v44, %s839_s19 }
 0xe1b   :  { %v507_v45 = vpop.permute.xlu2 %506 }
 0xe1c   :  { %v509_v46 = vmul.f32 %v507_v45, %v490_v39 }
 0xe1e   :  { %511 = vrot.lane.b32.xlu0 %v509_v46, %s840_s4 }
 0xe90   :  { %v512_v47 = vpop.permute.xlu0 %511 }
 0xe91   :  { %514 = vst.msk [vmem:[#allocation3 + $0x5] sm:$0x1] %vm168_vm8, %v512_v47  ;;  %730 = vmatmul.msk.f32.vlgmr.msra.gmra.mxu1 %vm103_vm9, %v512_v47 }
 0xf0e   :  { %v539_v49 = vpop.f32.mrf.mxu1 }
 0xf0f   :  { %v540_v50 = vadd.f32 %v539_v49, %v519_v48 }
 0xf11   :  { %791 = vtanh.f32 %v540_v50  ;;  %v731_v52 = vmul.f32 -1.442695, %v540_v50 }
 0xf13   :  { %793 = vpow2.f32 %v731_v52 }
 0xf17   :  { %v792_v51 = vpop.eup %791 }
 0xf18   :  { %564 = vrot.lane.b32.xlu1 %v792_v51, %s839_s19 }
 0xf19   :  { %v794_v53 = vpop.eup %793 }
 0xf1a   :  { %v545_v54 = vadd.f32 1.0, %v794_v53 }
 0xf1c   :  { %795 = vrcp.f32 %v545_v54  ;;  %v557_v60 = vand.u32 2147483648, %v545_v54  ;;  %vm551_vm1 = vweird.f32 %v545_v54  ;;  %v555_v61 = vand.u32 2147483647, %v545_v54 }
 0xf1e   :  { %v558_v63 = vor.u32 1.1754944e-38, %v557_v60  ;;  %vm556_vm3 = vcmp.eq.f32.partialorder %v555_v61, 8.507059e+37 }
 0xf22   :  { %v796_v55 = vpop.eup %795 }
 0xf23   :  { %v547_v56 = vmul.f32 %v796_v55, %v545_v54  ;;  %vm552_vm0 = vweird.f32 %v796_v55 }
 0xf24   :  { %vm553_vm2 = vmor %vm551_vm1, %vm552_vm0 }
 0xf25   :  { %v548_v57 = vsub.f32 1.0, %v547_v56 }
 0xf27   :  { %v549_v58 = vmul.f32 %v796_v55, %v548_v57 }
 0xf29   :  { %v550_v59 = vadd.f32 %v796_v55, %v549_v58 }
 0xf2b   :  { %v554_v62 = vsel %vm553_vm2, %v796_v55, %v550_v59 }
 0xf2c   :  { %v559_v1 = vsel %vm556_vm3, %v558_v63, %v554_v62 }
 0xf2d   :  { %v562_v3 = vmul.f32 %v559_v1, %v503_v43 }
 0xf8a   :  { %v565_v0 = vpop.permute.xlu1 %564 }
 0xf8b   :  { %v567_v2 = vmul.f32 %v565_v0, %v559_v1 }
 0xf8d   :  { %569 = vrot.lane.b32.xlu2 %v567_v2, %s840_s4 }
 0xfe7   :  { %v570_v4 = vpop.permute.xlu2 %569 }
 0xfe8   :  { %v572_v5 = vadd.f32 %v570_v4, %v562_v3 }
 0xfea   :  { %797 = vtanh.f32 %v572_v5 }
 0xff0   :  { %v798_v6 = vpop.eup %797 }
 0xff1   :  { %575 = vrot.lane.b32.xlu0 %v798_v6, %s839_s19 }
0x1063   :  { %v576_v7 = vpop.permute.xlu0 %575 }
0x1064   :  { %v578_v8 = vmul.f32 %v576_v7, %v559_v1 }
0x1066   :  { %580 = vrot.lane.b32.xlu1 %v578_v8, %s840_s4 }
0x10d8   :  { %v581_v9 = vpop.permute.xlu1 %580 }
0x10d9   :  { %583 = vst.msk [vmem:[#allocation3 + $0x6] sm:$0x1] %vm168_vm8, %v581_v9  ;;  %732 = vmatmul.msk.f32.vlgmr.msra.gmra.mxu0 %vm103_vm9, %v581_v9 }
0x1156   :  { %v608_v11 = vpop.f32.mrf.mxu0 }
0x1157   :  { %v609_v12 = vadd.f32 %v608_v11, %v588_v10 }
0x1159   :  { %799 = vtanh.f32 %v609_v12  ;;  %v733_v14 = vmul.f32 -1.442695, %v609_v12 }
0x115b   :  { %801 = vpow2.f32 %v733_v14 }
0x115f   :  { %v800_v13 = vpop.eup %799 }
0x1160   :  { %633 = vrot.lane.b32.xlu2 %v800_v13, %s839_s19 }
0x1161   :  { %v802_v15 = vpop.eup %801 }
0x1162   :  { %v614_v16 = vadd.f32 1.0, %v802_v15 }
0x1164   :  { %803 = vrcp.f32 %v614_v16  ;;  %v626_v22 = vand.u32 2147483648, %v614_v16  ;;  %vm620_vm5 = vweird.f32 %v614_v16  ;;  %v624_v23 = vand.u32 2147483647, %v614_v16 }
0x1166   :  { %v627_v25 = vor.u32 1.1754944e-38, %v626_v22  ;;  %vm625_vm7 = vcmp.eq.f32.partialorder %v624_v23, 8.507059e+37 }
0x116a   :  { %v804_v17 = vpop.eup %803 }
0x116b   :  { %v616_v18 = vmul.f32 %v804_v17, %v614_v16  ;;  %vm621_vm4 = vweird.f32 %v804_v17 }
0x116c   :  { %vm622_vm6 = vmor %vm620_vm5, %vm621_vm4 }
0x116d   :  { %v617_v19 = vsub.f32 1.0, %v616_v18 }
0x116f   :  { %v618_v20 = vmul.f32 %v804_v17, %v617_v19 }
0x1171   :  { %v619_v21 = vadd.f32 %v804_v17, %v618_v20 }
0x1173   :  { %v623_v24 = vsel %vm622_vm6, %v804_v17, %v619_v21 }
0x1174   :  { %v628_v27 = vsel %vm625_vm7, %v627_v25, %v623_v24 }
0x1175   :  { %v631_v29 = vmul.f32 %v628_v27, %v572_v5 }
0x11ba   :  { %v634_v26 = vpop.permute.xlu2 %633 }
0x11bb   :  { %v636_v28 = vmul.f32 %v634_v26, %v628_v27 }
0x11bd   :  { %638 = vrot.lane.b32.xlu0 %v636_v28, %s840_s4 }
0x122f   :  { %v639_v30 = vpop.permute.xlu0 %638 }
0x1230   :  { %v641_v31 = vadd.f32 %v639_v30, %v631_v29 }
0x1232   :  { %805 = vtanh.f32 %v641_v31 }
0x1238   :  { %v806_v32 = vpop.eup %805 }
0x1239   :  { %644 = vrot.lane.b32.xlu1 %v806_v32, %s839_s19 }
0x12ab   :  { %v645_v33 = vpop.permute.xlu1 %644 }
0x12ac   :  { %v647_v34 = vmul.f32 %v645_v33, %v628_v27 }
0x12ae   :  { %649 = vrot.lane.b32.xlu2 %v647_v34, %s840_s4 }
0x1308   :  { %v650_v39 = vpop.permute.xlu2 %649 }
0x1309   :  { %652 = vst.msk [vmem:[#allocation3 + $0x7] sm:$0x1] %vm168_vm8, %v650_v39 }
0x1310   :  { %v653_v40 = vld [vmem:[#allocation3] sm:$0xff] }
0x1311   :  { %734 = vmatmul.msk.f32.vlgmr.msra.gmra.mxu2 %vm103_vm9, %v653_v40 }
0x1394   :  { %v682_v42 = vpop.f32.mrf.mxu2 }
0x1395   :  { %v683_v43 = vadd.f32 %v742_v41, %v682_v42 }
0x1397   :  { %v686_v44 = vsel %vm685_vm10, %v683_v43, -inf }
0x1398   :  { %687 = vmax.xlane.f32.xlu0 %v686_v44 }
0x140b   :  { %v688_v45 = vpop.xlane.xlu0 %687 }
0x140c   :  { %v689_v46 = vsub.f32 %v683_v43, %v688_v45 }
0x140e   :  { %v690_v47 = vmul.f32 1.442695, %v689_v46 }
0x1410   :  { %807 = vpow2.f32 %v690_v47 }
0x1416   :  { %v808_v48 = vpop.eup %807 }
0x1417   :  { %v692_v49 = vsel %vm685_vm10, %v808_v48, 0.0 }
0x1418   :  { %693 = vadd.xlane.f32.xlu1 %v692_v49 }
0x148b   :  { %v694_v50 = vpop.xlane.xlu1 %693 }
0x148c   :  { %809 = vlog2.f32 %v694_v50 }
0x1492   :  { %v810_v51 = vpop.eup %809 }
0x1493   :  { %v696_v52 = vmul.f32 0.6931472, %v810_v51 }
0x1495   :  { %v697_v53 = vsub.f32 %v689_v46, %v696_v52 }
0x1497   :  { %698 = vst.msk [vmem:[#allocation4] sm:$0xff] %vm685_vm10, %v697_v53 }
0x1498   :  { %709 = dma.vmem_to_hbm [thread:$0]  %s705_s30, 128, %s707_s0, [#allocation5]  }
0x1499   :  { %835 = dma.done.wait [#allocation5], 128  }
0x149a   :  { %836 = vsyncadd [#allocation5], 4294967168 }
0x149b   :  { %714 = vsyncpa [#allocation5], 1 }

</bundles_post_ra>
